<compile_context>
chip_gen: v5e
topology: v5e:2x2
jax: 0.10.0
libtpu: 0.0.40
codegen_flags: <defaults>
</compile_context>

<pallas_src>
import functools

import jax
import jax.numpy as jnp
from jax.experimental import pallas as pl
from jax.experimental.pallas import tpu as pltpu

LANE = 128      # TPU lane width (feature axes are zero-padded to this)
SUBLANE = 8     # TPU sublane width (graph axis padded to this)


def _round_up(v, m):
    return (v + m - 1) // m * m


def _pad_to(arr, shape):
    pads = [(0, t - s) for s, t in zip(arr.shape, shape)]
    return jnp.pad(arr, pads)


def _choose_tiles(n_pad):
    """Row tile (tm) and reduction tile (tk) for streaming A_hat.

    Both divide n_pad (a multiple of 128) and satisfy the (8,128) constraint.
    Sized so a double-buffered bf16 A tile stays in the few-hundred-KiB range,
    comfortably inside the v7x 64 MiB physical / v5e-v6e scoped VMEM budget.
    """
    tm = 256 if n_pad % 256 == 0 else 128
    tk = 512 if n_pad % 512 == 0 else (256 if n_pad % 256 == 0 else 128)
    return tm, tk


# ----------------------------- Pallas kernel ---------------------------------

def fused_gnn_kernel(a_ref, ax_ref, p_ref,
                     wg1_ref, bg1_ref, wg_ref, bg_ref,
                     wc1_ref, bc1_ref, wc2_ref, bc2_ref, wc3_ref, bc3_ref,
                     o_ref,
                     acc_ref, h_ref, pooled_ref,
                     *, tm, tk):
    """Whole GNN forward, tiled over the adjacency.

    Grid: (layer L in {0,1}, row tile i, reduction tile k) — all "arbitrary"
    (scratch-carried dependencies across i/k and between layers).

    a_ref   : [tm, tk]    bf16  streamed tile of A_hat (zero padded)
    ax_ref  : [tk, 1]     f32   streamed tile of (A_hat @ x), precomputed
    p_ref   : [Gp, tm]    bf16  column tile of the mean-pool matrix
    wg1/bg1 : [1, 128]    f32   GCN layer-1 weight/bias (rank-1 input feature)
    wg / bg : [1,128,128] / [1,1,128]  layer-indexed GCN conv2/conv3 params
    wc*/bc* : classifier weights (bf16) / biases (f32), whole-resident
    o_ref   : [Gp, 128]   f32   padded logits, written once at the last step
    acc_ref   : [tm, 128] f32   VMEM scratch, A@H row-tile accumulator
    h_ref     : [Np, 128] bf16  VMEM scratch, layer-2 output (resident)
    pooled_ref: [Gp, 128] f32   VMEM scratch, mean-pool accumulator
    """
    f32, bf16 = jnp.float32, jnp.bfloat16
    L = pl.program_id(0)
    i = pl.program_id(1)
    k = pl.program_id(2)
    ni = pl.num_programs(1)
    nk = pl.num_programs(2)

    # ---- init accumulators ---------------------------------------------------
    @pl.when(jnp.logical_and(L == 0, jnp.logical_and(i == 0, k == 0)))
    def _():
        pooled_ref[...] = jnp.zeros_like(pooled_ref)

    @pl.when(k == 0)
    def _():
        acc_ref[...] = jnp.zeros_like(acc_ref)

    # ---- current-layer input embedding, k-tile -------------------------------
    # L == 0 (GCN conv2): H1[k] = relu(ax[k] * w1 + b1)   (VPU broadcast FMA —
    #   the rank-1 layer-1 GCNConv; ax = A_hat @ x precomputed outside).
    # L == 1 (GCN conv3): H2[k] read from the resident VMEM scratch.
    h1_tile = jnp.maximum(ax_ref[...] * wg1_ref[...] + bg1_ref[...], 0.0
                          ).astype(bf16)                                # [tk,128]
    h2_tile = h_ref[pl.ds(pl.multiple_of(k * tk, tk), tk), :]           # [tk,128]
    h_in = jnp.where(L == 0, h1_tile, h2_tile)

    # ---- propagate: acc += A[i,k] @ H[k]   (MXU, f32 accumulation) -----------
    acc_ref[...] += jnp.dot(a_ref[...], h_in, preferred_element_type=f32)

    # ---- end of the K sweep for this row tile --------------------------------
    @pl.when(k == nk - 1)
    def _():
        w_l = wg_ref[0]                                    # [128,128] bf16
        b_l = bg_ref[0]                                    # [1,128]   f32
        h_new = jnp.maximum(
            jnp.dot(acc_ref[...].astype(bf16), w_l, preferred_element_type=f32)
            + b_l, 0.0).astype(bf16)                       # [tm,128]
        # NOTE: padded node rows of h_new carry relu(bias) garbage; this stays
        # exact only because A_hat and P have all-zero columns for padded
        # nodes, so the garbage never reaches real outputs.

        @pl.when(L == 0)
        def _():
            # store the layer-2 output row tile for layer 3
            h_ref[pl.ds(pl.multiple_of(i * tm, tm), tm), :] = h_new

        @pl.when(L == 1)
        def _():
            # stream the layer-3 output row tile straight into the mean pool
            pooled_ref[...] += jnp.dot(p_ref[...], h_new,
                                       preferred_element_type=f32)

    # ---- final grid step: classifier MLP on pooled graph embeddings ----------
    @pl.when(jnp.logical_and(L == 1, jnp.logical_and(i == ni - 1, k == nk - 1)))
    def _():
        pooled = pooled_ref[...].astype(bf16)              # [Gp,128]
        z = jnp.maximum(jnp.dot(pooled, wc1_ref[...], preferred_element_type=f32)
                        + bc1_ref[...], 0.0).astype(bf16)
        z = jnp.maximum(jnp.dot(z, wc2_ref[...], preferred_element_type=f32)
                        + bc2_ref[...], 0.0).astype(bf16)
        o_ref[...] = (jnp.dot(z, wc3_ref[...], preferred_element_type=f32)
                      + bc3_ref[...]).astype(o_ref.dtype)


# ------------------------------ wrapper ---------------------------------------

def fused_forward(a_pad, ax_pad, p_pad, pp, *, num_graphs, num_classes):
    """One tiled pallas_call for the full forward; padding sliced off outside."""
    n_pad = a_pad.shape[0]
    g_pad = p_pad.shape[0]
    tm, tk = _choose_tiles(n_pad)
    ni, nk = n_pad // tm, n_pad // tk
    grid = (2, ni, nk)       # (GCN layer 2/3, A row tiles, reduction tiles)

    def whole(shape):        # small per-call-constant tensor: one resident block
        nd = len(shape)
        return pl.BlockSpec(shape, lambda L, i, k: (0,) * nd)

    in_specs = [
        pl.BlockSpec((tm, tk), lambda L, i, k: (i, k)),            # A_hat tile
        pl.BlockSpec((tk, 1), lambda L, i, k: (k, 0)),             # ax tile
        pl.BlockSpec((g_pad, tm), lambda L, i, k: (0, i)),         # P column tile
        whole((1, LANE)), whole((1, LANE)),                        # wg1, bg1
        pl.BlockSpec((1, LANE, LANE), lambda L, i, k: (L, 0, 0)),  # wg2 / wg3
        pl.BlockSpec((1, 1, LANE), lambda L, i, k: (L, 0, 0)),     # bg2 / bg3
        whole((LANE, LANE)), whole((1, LANE)),                     # wc1, bc1
        whole((LANE, LANE)), whole((1, LANE)),                     # wc2, bc2
        whole((LANE, LANE)), whole((1, LANE)),                     # wc3, bc3
    ]
    out_specs = pl.BlockSpec((g_pad, LANE), lambda L, i, k: (0, 0))
    scratch_shapes = [
        pltpu.VMEM((tm, LANE), jnp.float32),      # A@H row-tile accumulator
        pltpu.VMEM((n_pad, LANE), jnp.bfloat16),  # layer-2 output H2 (resident)
        pltpu.VMEM((g_pad, LANE), jnp.float32),   # mean-pool accumulator
    ]

    cost = pl.CostEstimate(
        flops=2 * (2 * n_pad * n_pad * LANE + 2 * n_pad * LANE * LANE)
              + 2 * g_pad * n_pad * LANE,
        transcendentals=0,
        bytes_accessed=2 * 2 * n_pad * n_pad + 4 * n_pad
                       + 2 * g_pad * n_pad + 4 * g_pad * LANE,
    )

    out_pad = pl.pallas_call(
        functools.partial(fused_gnn_kernel, tm=tm, tk=tk),
        out_shape=jax.ShapeDtypeStruct((g_pad, LANE), jnp.float32),
        grid_spec=pltpu.PrefetchScalarGridSpec(
            num_scalar_prefetch=0,
            grid=grid,
            in_specs=in_specs,
            out_specs=out_specs,
            scratch_shapes=scratch_shapes),
        compiler_params=pltpu.CompilerParams(
            # All axes "arbitrary": the H2 scratch carries layer-0 writes into
            # layer-1 reads and pooled_ref accumulates across row tiles.
            dimension_semantics=("arbitrary", "arbitrary", "arbitrary"),
            # Sized for v7x first (64 MiB physical); also raises the 16/32 MiB
            # v5e/v6e scoped defaults.  Tiles + scratches stay far under this.
            vmem_limit_bytes=48 * 1024 * 1024),
        cost_estimate=cost,
    )(a_pad, ax_pad, p_pad,
      pp["w_g1"], pp["b_g1"], pp["w_g23"], pp["b_g23"],
      pp["w_c1"], pp["b_c1"], pp["w_c2"], pp["b_c2"], pp["w_c3"], pp["b_c3"])
    return out_pad[:num_graphs, :num_classes]


# ------------------------- graph preprocessing (once) -------------------------

def build_norm_adj(edge_index, num_nodes):
    """Dense D^{-1/2}(A+I)D^{-1/2}, matching PyG GCNConv normalization.
    NOTE: duplicate edges are deduplicated (PyG's scatter would count them)."""
    src, dst = edge_index[0], edge_index[1]
    adj = jnp.zeros((num_nodes, num_nodes), jnp.float32)
    adj = adj.at[dst, src].set(1.0)                                    # src -> dst
    adj = jnp.maximum(adj, jnp.eye(num_nodes, dtype=jnp.float32))      # self-loops
    deg = adj.sum(axis=1)
    d_inv_sqrt = jax.lax.rsqrt(deg)
    return adj * d_inv_sqrt[:, None] * d_inv_sqrt[None, :]


def build_mean_pool(batch, num_graphs):
    """P[b, n] = 1/|graph b| if node n belongs to graph b else 0."""
    onehot = (batch[None, :] == jnp.arange(num_graphs)[:, None]).astype(jnp.float32)
    counts = onehot.sum(axis=1, keepdims=True)
    return onehot / jnp.maximum(counts, 1.0)


def prepare_graph(x, edge_index, batch, num_graphs):
    """Build & pad A_hat, ax = A_hat @ x, and P once per batch (outside jit).

    A_hat / P are stored bf16 for the MXU (~0.4% rounding of the degree /
    1/|graph| weights vs the f32 PyTorch reference; accumulation stays f32)."""
    n = x.shape[0]
    n_pad = _round_up(max(n, LANE), LANE)
    g_pad = _round_up(max(num_graphs, SUBLANE), SUBLANE)

    a_hat = build_norm_adj(edge_index, n)                  # [N,N] f32
    ax = a_hat @ x.astype(jnp.float32)                     # [N,1] f32 (layer-1 propagate)
    p = build_mean_pool(batch, num_graphs)                 # [G,N] f32

    a_pad = _pad_to(a_hat, (n_pad, n_pad)).astype(jnp.bfloat16)
    ax_pad = _pad_to(ax, (n_pad, 1)).astype(jnp.float32)
    p_pad = _pad_to(p, (g_pad, n_pad)).astype(jnp.bfloat16)
    return a_pad, ax_pad, p_pad


# ------------------------------- parameters -----------------------------------

def init_params(key, hidden_dim, num_classes):
    ks = jax.random.split(key, 6)

    def lin(k, fan_in, fan_out):
        scale = 1.0 / jnp.sqrt(jnp.float32(fan_in))
        w = jax.random.uniform(k, (fan_in, fan_out), jnp.float32, -scale, scale)
        b = jnp.zeros((1, fan_out), jnp.float32)
        return w, b

    p = {}
    p["w_g1"], p["b_g1"] = lin(ks[0], 1, hidden_dim)
    p["w_g2"], p["b_g2"] = lin(ks[1], hidden_dim, hidden_dim)
    p["w_g3"], p["b_g3"] = lin(ks[2], hidden_dim, hidden_dim)
    p["w_c1"], p["b_c1"] = lin(ks[3], hidden_dim, hidden_dim // 2)
    p["w_c2"], p["b_c2"] = lin(ks[4], hidden_dim // 2, hidden_dim // 4)
    p["w_c3"], p["b_c3"] = lin(ks[5], hidden_dim // 4, num_classes)
    return p


def pad_params(p):
    """Zero-pad feature dims to 128 lanes; bf16 MXU operands, f32 biases.
    Zero padding is exact through every matmul/ReLU in the kernel."""
    out = {}
    out["w_g1"] = _pad_to(p["w_g1"], (1, LANE)).astype(jnp.float32)   # VPU FMA path
    out["b_g1"] = _pad_to(p["b_g1"], (1, LANE)).astype(jnp.float32)
    out["w_g23"] = jnp.stack(
        [_pad_to(p["w_g2"], (LANE, LANE)),
         _pad_to(p["w_g3"], (LANE, LANE))]).astype(jnp.bfloat16)      # [2,128,128]
    out["b_g23"] = jnp.stack(
        [_pad_to(p["b_g2"], (1, LANE)),
         _pad_to(p["b_g3"], (1, LANE))]).astype(jnp.float32)          # [2,1,128]
    for name in ("w_c1", "w_c2", "w_c3"):
        out[name] = _pad_to(p[name], (LANE, LANE)).astype(jnp.bfloat16)
    for name in ("b_c1", "b_c2", "b_c3"):
        out[name] = _pad_to(p[name], (1, LANE)).astype(jnp.float32)
    return out


# ------------------------------- reference ------------------------------------

def reference_forward(x, edge_index, batch, num_graphs, p):
    """Pure-JAX f32 reference matching the PyTorch module (inference)."""
    a_hat = build_norm_adj(edge_index, x.shape[0])
    h = jnp.maximum(a_hat @ (x @ p["w_g1"]) + p["b_g1"], 0.0)
    h = jnp.maximum(a_hat @ (h @ p["w_g2"]) + p["b_g2"], 0.0)
    h = jnp.maximum(a_hat @ (h @ p["w_g3"]) + p["b_g3"], 0.0)
    g = build_mean_pool(batch, num_graphs) @ h
    z = jnp.maximum(g @ p["w_c1"] + p["b_c1"], 0.0)
    z = jnp.maximum(z @ p["w_c2"] + p["b_c2"], 0.0)
    return z @ p["w_c3"] + p["b_c3"]


# --------------------------------- main ---------------------------------------

if __name__ == "__main__":
    hidden_dim = 32
    num_classes = 4
    nodes_per_graph = 8
    num_graphs = 2
    n = nodes_per_graph * num_graphs          # 16 nodes total

    key = jax.random.PRNGKey(0)
    k_x, k_p = jax.random.split(key)

    # node features [N, 1]
    x = jax.random.normal(k_x, (n, 1), jnp.float32)

    # symmetric chain edges inside each graph
    src_list, dst_list = [], []
    for g in range(num_graphs):
        base = g * nodes_per_graph
        for i in range(nodes_per_graph - 1):
            a, b = base + i, base + i + 1
            src_list += [a, b]
            dst_list += [b, a]
    edge_index = jnp.array([src_list, dst_list], dtype=jnp.int32)
    batch = jnp.repeat(jnp.arange(num_graphs, dtype=jnp.int32), nodes_per_graph)

    # Graph-structure tensors and padded parameters built ONCE, outside jit.
    a_pad, ax_pad, p_pad = prepare_graph(x, edge_index, batch, num_graphs)
    params = init_params(k_p, hidden_dim, num_classes)
    params_pad = pad_params(params)

    fwd = jax.jit(functools.partial(
        fused_forward, num_graphs=num_graphs, num_classes=num_classes))

    out = jax.block_until_ready(fwd(a_pad, ax_pad, p_pad, params_pad))
    assert out.shape == (num_graphs, num_classes)
    assert bool(jnp.all(jnp.isfinite(out)))

    # correctness check vs pure-JAX f32 reference (bf16 A/P/weights -> loose tol)
    ref = reference_forward(x, edge_index, batch, num_graphs, params)
    max_err = float(jnp.max(jnp.abs(out - ref)))
    assert bool(jnp.allclose(out, ref, rtol=5e-2, atol=5e-2)), (
        f"mismatch vs f32 reference: max |err| = {max_err}")

    print("KERNEL_OK")
</pallas_src>

<mosaic_0001>
module attributes {stable_mosaic.version = 11 : i64} {
  func.func @fused_gnn_kernel(%arg0: i32, %arg1: i32, %arg2: i32, %arg3: memref<128x128xbf16, #tpu.memory_space<vmem>>, %arg4: memref<128x1xf32, #tpu.memory_space<vmem>>, %arg5: memref<8x128xbf16, #tpu.memory_space<vmem>>, %arg6: memref<1x128xf32, #tpu.memory_space<vmem>>, %arg7: memref<1x128xf32, #tpu.memory_space<vmem>>, %arg8: memref<1x128x128xbf16, #tpu.memory_space<vmem>>, %arg9: memref<1x1x128xf32, #tpu.memory_space<vmem>>, %arg10: memref<128x128xbf16, #tpu.memory_space<vmem>>, %arg11: memref<1x128xf32, #tpu.memory_space<vmem>>, %arg12: memref<128x128xbf16, #tpu.memory_space<vmem>>, %arg13: memref<1x128xf32, #tpu.memory_space<vmem>>, %arg14: memref<128x128xbf16, #tpu.memory_space<vmem>>, %arg15: memref<1x128xf32, #tpu.memory_space<vmem>>, %arg16: memref<8x128xf32, #tpu.memory_space<vmem>>, %arg17: memref<128x128xf32, #tpu.memory_space<vmem>>, %arg18: memref<128x128xbf16, #tpu.memory_space<vmem>>, %arg19: memref<8x128xf32, #tpu.memory_space<vmem>>) attributes {dimension_semantics = [#tpu.dimension_semantics<arbitrary>, #tpu.dimension_semantics<arbitrary>, #tpu.dimension_semantics<arbitrary>], iteration_bounds = array<i64: 2, 1, 1>, scalar_prefetch = 0 : i64, scratch_operands = 3 : i64, tpu.core_type = #tpu.core_type<tc>, window_params = [{transform_indices = @transform_0, window_bounds = array<i64: 128, 128>}, {transform_indices = @transform_1, window_bounds = array<i64: 128, 1>}, {transform_indices = @transform_2, window_bounds = array<i64: 8, 128>}, {pipeline_mode = #tpu.pipeline_mode<synchronous>, transform_indices = @transform_3, window_bounds = array<i64: 1, 128>}, {pipeline_mode = #tpu.pipeline_mode<synchronous>, transform_indices = @transform_4, window_bounds = array<i64: 1, 128>}, {transform_indices = @transform_5, window_bounds = array<i64: 1, 128, 128>}, {transform_indices = @transform_6, window_bounds = array<i64: 1, 1, 128>}, {pipeline_mode = #tpu.pipeline_mode<synchronous>, transform_indices = @transform_7, window_bounds = array<i64: 128, 128>}, {pipeline_mode = #tpu.pipeline_mode<synchronous>, transform_indices = @transform_8, window_bounds = array<i64: 1, 128>}, {pipeline_mode = #tpu.pipeline_mode<synchronous>, transform_indices = @transform_9, window_bounds = array<i64: 128, 128>}, {pipeline_mode = #tpu.pipeline_mode<synchronous>, transform_indices = @transform_10, window_bounds = array<i64: 1, 128>}, {pipeline_mode = #tpu.pipeline_mode<synchronous>, transform_indices = @transform_11, window_bounds = array<i64: 128, 128>}, {pipeline_mode = #tpu.pipeline_mode<synchronous>, transform_indices = @transform_12, window_bounds = array<i64: 1, 128>}, {pipeline_mode = #tpu.pipeline_mode<synchronous>, transform_indices = @transform_13, window_bounds = array<i64: 8, 128>}]} {
    %c0_i32 = arith.constant 0 : i32
    %0 = arith.cmpi eq, %arg0, %c0_i32 : i32
    %c0_i32_0 = arith.constant 0 : i32
    %1 = arith.cmpi eq, %arg1, %c0_i32_0 : i32
    %c0_i32_1 = arith.constant 0 : i32
    %2 = arith.cmpi eq, %arg2, %c0_i32_1 : i32
    %3 = arith.andi %1, %2 : i1
    %4 = arith.andi %0, %3 : i1
    %5 = arith.extui %4 : i1 to i32
    %c0_i32_2 = arith.constant 0 : i32
    %6 = arith.cmpi ne, %5, %c0_i32_2 : i32
    scf.if %6 {
      %cst_24 = arith.constant 0.000000e+00 : f32
      %42 = vector.broadcast %cst_24 : f32 to vector<8x128xf32>
      %c0_25 = arith.constant 0 : index
      %c0_26 = arith.constant 0 : index
      %43 = vector.load %arg19[%c0_25, %c0_26] : memref<8x128xf32, #tpu.memory_space<vmem>>, vector<8x128xf32>
      tpu.vector_store %arg19[%c0_25, %c0_26], %42 {strides = array<i32>} : memref<8x128xf32, #tpu.memory_space<vmem>>, vector<8x128xf32>,
    } else {
    }
    %c0_i32_3 = arith.constant 0 : i32
    %7 = arith.cmpi eq, %arg2, %c0_i32_3 : i32
    %8 = arith.extui %7 : i1 to i32
    %c0_i32_4 = arith.constant 0 : i32
    %9 = arith.cmpi ne, %8, %c0_i32_4 : i32
    scf.if %9 {
      %cst_24 = arith.constant 0.000000e+00 : f32
      %42 = vector.broadcast %cst_24 : f32 to vector<128x128xf32>
      %c0_25 = arith.constant 0 : index
      %c0_26 = arith.constant 0 : index
      %43 = vector.load %arg17[%c0_25, %c0_26] : memref<128x128xf32, #tpu.memory_space<vmem>>, vector<128x128xf32>
      tpu.vector_store %arg17[%c0_25, %c0_26], %42 {strides = array<i32>} : memref<128x128xf32, #tpu.memory_space<vmem>>, vector<128x128xf32>,
    } else {
    }
    %c0 = arith.constant 0 : index
    %c0_5 = arith.constant 0 : index
    %10 = vector.load %arg4[%c0, %c0_5] : memref<128x1xf32, #tpu.memory_space<vmem>>, vector<128x1xf32>
    %c0_6 = arith.constant 0 : index
    %c0_7 = arith.constant 0 : index
    %11 = vector.load %arg6[%c0_6, %c0_7] : memref<1x128xf32, #tpu.memory_space<vmem>>, vector<1x128xf32>
    %12 = vector.broadcast %10 : vector<128x1xf32> to vector<128x128xf32>
    %13 = vector.broadcast %11 : vector<1x128xf32> to vector<128x128xf32>
    %14 = arith.mulf %12, %13 : vector<128x128xf32>
    %c0_8 = arith.constant 0 : index
    %c0_9 = arith.constant 0 : index
    %15 = vector.load %arg7[%c0_8, %c0_9] : memref<1x128xf32, #tpu.memory_space<vmem>>, vector<1x128xf32>
    %16 = vector.broadcast %15 : vector<1x128xf32> to vector<128x128xf32>
    %17 = arith.addf %14, %16 : vector<128x128xf32>
    %cst = arith.constant 0.000000e+00 : f32
    %18 = vector.broadcast %cst : f32 to vector<128x128xf32>
    %19 = arith.maximumf %17, %18 : vector<128x128xf32>
    %20 = arith.truncf %19 : vector<128x128xf32> to vector<128x128xbf16>
    %c128_i32 = arith.constant 128 : i32
    %21 = arith.muli %arg2, %c128_i32 : i32
    %22 = tpu.assume_multiple %21, 128 : i32
    %23 = arith.index_cast %22 : i32 to index
    %c0_10 = arith.constant 0 : index
    %24 = vector.load %arg18[%23, %c0_10] : memref<128x128xbf16, #tpu.memory_space<vmem>>, vector<128x128xbf16>
    %c0_i32_11 = arith.constant 0 : i32
    %25 = arith.cmpi eq, %arg0, %c0_i32_11 : i32
    %26 = arith.select %25, %20, %24 : vector<128x128xbf16>
    %c0_12 = arith.constant 0 : index
    %c0_13 = arith.constant 0 : index
    %27 = vector.load %arg17[%c0_12, %c0_13] : memref<128x128xf32, #tpu.memory_space<vmem>>, vector<128x128xf32>
    %c0_14 = arith.constant 0 : index
    %c0_15 = arith.constant 0 : index
    %28 = vector.load %arg3[%c0_14, %c0_15] : memref<128x128xbf16, #tpu.memory_space<vmem>>, vector<128x128xbf16>
    %cst_16 = arith.constant dense<0.000000e+00> : vector<128x128xf32>
    %29 = tpu.matmul %28, %26, %cst_16 {dimension_numbers = #tpu.dot_dimension_numbers<[1], [0], [0], [1], [0, 0, 1, 1], [], []>} : vector<128x128xbf16>, vector<128x128xbf16>, vector<128x128xf32> -> vector<128x128xf32>
    %30 = arith.addf %27, %29 : vector<128x128xf32>
    %c0_17 = arith.constant 0 : index
    %c0_18 = arith.constant 0 : index
    %31 = vector.load %arg17[%c0_17, %c0_18] : memref<128x128xf32, #tpu.memory_space<vmem>>, vector<128x128xf32>
    tpu.vector_store %arg17[%c0_17, %c0_18], %30 {strides = array<i32>} : memref<128x128xf32, #tpu.memory_space<vmem>>, vector<128x128xf32>,
    %c0_i32_19 = arith.constant 0 : i32
    %32 = arith.cmpi eq, %arg2, %c0_i32_19 : i32
    %33 = arith.extui %32 : i1 to i32
    %c0_i32_20 = arith.constant 0 : i32
    %34 = arith.cmpi ne, %33, %c0_i32_20 : i32
    scf.if %34 {
      %c0_24 = arith.constant 0 : index
      %c0_25 = arith.constant 0 : index
      %c0_26 = arith.constant 0 : index
      %42 = vector.load %arg8[%c0_24, %c0_25, %c0_26] : memref<1x128x128xbf16, #tpu.memory_space<vmem>>, vector<1x128x128xbf16>
      %43 = vector.shape_cast %42 : vector<1x128x128xbf16> to vector<128x128xbf16>
      %c0_27 = arith.constant 0 : index
      %c0_28 = arith.constant 0 : index
      %c0_29 = arith.constant 0 : index
      %44 = vector.load %arg9[%c0_27, %c0_28, %c0_29] : memref<1x1x128xf32, #tpu.memory_space<vmem>>, vector<1x1x128xf32>
      %45 = vector.shape_cast %44 : vector<1x1x128xf32> to vector<1x128xf32>
      %c0_30 = arith.constant 0 : index
      %c0_31 = arith.constant 0 : index
      %46 = vector.load %arg17[%c0_30, %c0_31] : memref<128x128xf32, #tpu.memory_space<vmem>>, vector<128x128xf32>
      %47 = arith.truncf %46 : vector<128x128xf32> to vector<128x128xbf16>
      %cst_32 = arith.constant dense<0.000000e+00> : vector<128x128xf32>
      %48 = tpu.matmul %47, %43, %cst_32 {dimension_numbers = #tpu.dot_dimension_numbers<[1], [0], [0], [1], [0, 0, 1, 1], [], []>} : vector<128x128xbf16>, vector<128x128xbf16>, vector<128x128xf32> -> vector<128x128xf32>
      %49 = vector.broadcast %45 : vector<1x128xf32> to vector<128x128xf32>
      %50 = arith.addf %48, %49 : vector<128x128xf32>
      %cst_33 = arith.constant 0.000000e+00 : f32
      %51 = vector.broadcast %cst_33 : f32 to vector<128x128xf32>
      %52 = arith.maximumf %50, %51 : vector<128x128xf32>
      %53 = arith.truncf %52 : vector<128x128xf32> to vector<128x128xbf16>
      %c0_i32_34 = arith.constant 0 : i32
      %54 = arith.cmpi eq, %arg0, %c0_i32_34 : i32
      %55 = arith.extui %54 : i1 to i32
      %c0_i32_35 = arith.constant 0 : i32
      %56 = arith.cmpi ne, %55, %c0_i32_35 : i32
      scf.if %56 {
        %c128_i32_38 = arith.constant 128 : i32
        %60 = arith.muli %arg1, %c128_i32_38 : i32
        %61 = tpu.assume_multiple %60, 128 : i32
        %62 = arith.index_cast %61 : i32 to index
        %c0_39 = arith.constant 0 : index
        %63 = vector.load %arg18[%62, %c0_39] : memref<128x128xbf16, #tpu.memory_space<vmem>>, vector<128x128xbf16>
        tpu.vector_store %arg18[%62, %c0_39], %53 {strides = array<i32>} : memref<128x128xbf16, #tpu.memory_space<vmem>>, vector<128x128xbf16>,
      } else {
      }
      %c1_i32_36 = arith.constant 1 : i32
      %57 = arith.cmpi eq, %arg0, %c1_i32_36 : i32
      %58 = arith.extui %57 : i1 to i32
      %c0_i32_37 = arith.constant 0 : i32
      %59 = arith.cmpi ne, %58, %c0_i32_37 : i32
      scf.if %59 {
        %c0_38 = arith.constant 0 : index
        %c0_39 = arith.constant 0 : index
        %60 = vector.load %arg19[%c0_38, %c0_39] : memref<8x128xf32, #tpu.memory_space<vmem>>, vector<8x128xf32>
        %c0_40 = arith.constant 0 : index
        %c0_41 = arith.constant 0 : index
        %61 = vector.load %arg5[%c0_40, %c0_41] : memref<8x128xbf16, #tpu.memory_space<vmem>>, vector<8x128xbf16>
        %cst_42 = arith.constant dense<0.000000e+00> : vector<8x128xf32>
        %62 = tpu.matmul %61, %53, %cst_42 {dimension_numbers = #tpu.dot_dimension_numbers<[1], [0], [0], [1], [0, 0, 1, 1], [], []>} : vector<8x128xbf16>, vector<128x128xbf16>, vector<8x128xf32> -> vector<8x128xf32>
        %63 = arith.addf %60, %62 : vector<8x128xf32>
        %c0_43 = arith.constant 0 : index
        %c0_44 = arith.constant 0 : index
        %64 = vector.load %arg19[%c0_43, %c0_44] : memref<8x128xf32, #tpu.memory_space<vmem>>, vector<8x128xf32>
        tpu.vector_store %arg19[%c0_43, %c0_44], %63 {strides = array<i32>} : memref<8x128xf32, #tpu.memory_space<vmem>>, vector<8x128xf32>,
      } else {
      }
    } else {
    }
    %c1_i32 = arith.constant 1 : i32
    %35 = arith.cmpi eq, %arg0, %c1_i32 : i32
    %c0_i32_21 = arith.constant 0 : i32
    %36 = arith.cmpi eq, %arg1, %c0_i32_21 : i32
    %c0_i32_22 = arith.constant 0 : i32
    %37 = arith.cmpi eq, %arg2, %c0_i32_22 : i32
    %38 = arith.andi %36, %37 : i1
    %39 = arith.andi %35, %38 : i1
    %40 = arith.extui %39 : i1 to i32
    %c0_i32_23 = arith.constant 0 : i32
    %41 = arith.cmpi ne, %40, %c0_i32_23 : i32
    scf.if %41 {
      %c0_24 = arith.constant 0 : index
      %c0_25 = arith.constant 0 : index
      %42 = vector.load %arg19[%c0_24, %c0_25] : memref<8x128xf32, #tpu.memory_space<vmem>>, vector<8x128xf32>
      %43 = arith.truncf %42 : vector<8x128xf32> to vector<8x128xbf16>
      %c0_26 = arith.constant 0 : index
      %c0_27 = arith.constant 0 : index
      %44 = vector.load %arg10[%c0_26, %c0_27] : memref<128x128xbf16, #tpu.memory_space<vmem>>, vector<128x128xbf16>
      %cst_28 = arith.constant dense<0.000000e+00> : vector<8x128xf32>
      %45 = tpu.matmul %43, %44, %cst_28 {dimension_numbers = #tpu.dot_dimension_numbers<[1], [0], [0], [1], [0, 0, 1, 1], [], []>} : vector<8x128xbf16>, vector<128x128xbf16>, vector<8x128xf32> -> vector<8x128xf32>
      %c0_29 = arith.constant 0 : index
      %c0_30 = arith.constant 0 : index
      %46 = vector.load %arg11[%c0_29, %c0_30] : memref<1x128xf32, #tpu.memory_space<vmem>>, vector<1x128xf32>
      %47 = vector.broadcast %46 : vector<1x128xf32> to vector<8x128xf32>
      %48 = arith.addf %45, %47 : vector<8x128xf32>
      %cst_31 = arith.constant 0.000000e+00 : f32
      %49 = vector.broadcast %cst_31 : f32 to vector<8x128xf32>
      %50 = arith.maximumf %48, %49 : vector<8x128xf32>
      %51 = arith.truncf %50 : vector<8x128xf32> to vector<8x128xbf16>
      %c0_32 = arith.constant 0 : index
      %c0_33 = arith.constant 0 : index
      %52 = vector.load %arg12[%c0_32, %c0_33] : memref<128x128xbf16, #tpu.memory_space<vmem>>, vector<128x128xbf16>
      %cst_34 = arith.constant dense<0.000000e+00> : vector<8x128xf32>
      %53 = tpu.matmul %51, %52, %cst_34 {dimension_numbers = #tpu.dot_dimension_numbers<[1], [0], [0], [1], [0, 0, 1, 1], [], []>} : vector<8x128xbf16>, vector<128x128xbf16>, vector<8x128xf32> -> vector<8x128xf32>
      %c0_35 = arith.constant 0 : index
      %c0_36 = arith.constant 0 : index
      %54 = vector.load %arg13[%c0_35, %c0_36] : memref<1x128xf32, #tpu.memory_space<vmem>>, vector<1x128xf32>
      %55 = vector.broadcast %54 : vector<1x128xf32> to vector<8x128xf32>
      %56 = arith.addf %53, %55 : vector<8x128xf32>
      %cst_37 = arith.constant 0.000000e+00 : f32
      %57 = vector.broadcast %cst_37 : f32 to vector<8x128xf32>
      %58 = arith.maximumf %56, %57 : vector<8x128xf32>
      %59 = arith.truncf %58 : vector<8x128xf32> to vector<8x128xbf16>
      %c0_38 = arith.constant 0 : index
      %c0_39 = arith.constant 0 : index
      %60 = vector.load %arg14[%c0_38, %c0_39] : memref<128x128xbf16, #tpu.memory_space<vmem>>, vector<128x128xbf16>
      %cst_40 = arith.constant dense<0.000000e+00> : vector<8x128xf32>
      %61 = tpu.matmul %59, %60, %cst_40 {dimension_numbers = #tpu.dot_dimension_numbers<[1], [0], [0], [1], [0, 0, 1, 1], [], []>} : vector<8x128xbf16>, vector<128x128xbf16>, vector<8x128xf32> -> vector<8x128xf32>
      %c0_41 = arith.constant 0 : index
      %c0_42 = arith.constant 0 : index
      %62 = vector.load %arg15[%c0_41, %c0_42] : memref<1x128xf32, #tpu.memory_space<vmem>>, vector<1x128xf32>
      %63 = vector.broadcast %62 : vector<1x128xf32> to vector<8x128xf32>
      %64 = arith.addf %61, %63 : vector<8x128xf32>
      %c0_43 = arith.constant 0 : index
      %c0_44 = arith.constant 0 : index
      %65 = vector.load %arg16[%c0_43, %c0_44] : memref<8x128xf32, #tpu.memory_space<vmem>>, vector<8x128xf32>
      tpu.vector_store %arg16[%c0_43, %c0_44], %64 {strides = array<i32>} : memref<8x128xf32, #tpu.memory_space<vmem>>, vector<8x128xf32>,
    } else {
    }
    return
  }
  func.func @transform_0(%arg0: i32, %arg1: i32, %arg2: i32) -> (i32, i32) {
    %c0_i32 = arith.constant 0 : i32
    return %arg1, %arg2 : i32, i32
  }
  func.func @transform_1(%arg0: i32, %arg1: i32, %arg2: i32) -> (i32, i32) {
    %c0_i32 = arith.constant 0 : i32
    %c0_i32_0 = arith.constant 0 : i32
    return %arg2, %c0_i32 : i32, i32
  }
  func.func @transform_2(%arg0: i32, %arg1: i32, %arg2: i32) -> (i32, i32) {
    %c0_i32 = arith.constant 0 : i32
    %c0_i32_0 = arith.constant 0 : i32
    return %c0_i32, %arg1 : i32, i32
  }
  func.func @transform_3(%arg0: i32, %arg1: i32, %arg2: i32) -> (i32, i32) {
    %c0_i32 = arith.constant 0 : i32
    %c0_i32_0 = arith.constant 0 : i32
    %c0_i32_1 = arith.constant 0 : i32
    return %c0_i32, %c0_i32_0 : i32, i32
  }
  func.func @transform_4(%arg0: i32, %arg1: i32, %arg2: i32) -> (i32, i32) {
    %c0_i32 = arith.constant 0 : i32
    %c0_i32_0 = arith.constant 0 : i32
    %c0_i32_1 = arith.constant 0 : i32
    return %c0_i32, %c0_i32_0 : i32, i32
  }
  func.func @transform_5(%arg0: i32, %arg1: i32, %arg2: i32) -> (i32, i32, i32) {
    %c0_i32 = arith.constant 0 : i32
    %c0_i32_0 = arith.constant 0 : i32
    %c0_i32_1 = arith.constant 0 : i32
    return %arg0, %c0_i32, %c0_i32_0 : i32, i32, i32
  }
  func.func @transform_6(%arg0: i32, %arg1: i32, %arg2: i32) -> (i32, i32, i32) {
    %c0_i32 = arith.constant 0 : i32
    %c0_i32_0 = arith.constant 0 : i32
    %c0_i32_1 = arith.constant 0 : i32
    return %arg0, %c0_i32, %c0_i32_0 : i32, i32, i32
  }
  func.func @transform_7(%arg0: i32, %arg1: i32, %arg2: i32) -> (i32, i32) {
    %c0_i32 = arith.constant 0 : i32
    %c0_i32_0 = arith.constant 0 : i32
    %c0_i32_1 = arith.constant 0 : i32
    return %c0_i32, %c0_i32_0 : i32, i32
  }
  func.func @transform_8(%arg0: i32, %arg1: i32, %arg2: i32) -> (i32, i32) {
    %c0_i32 = arith.constant 0 : i32
    %c0_i32_0 = arith.constant 0 : i32
    %c0_i32_1 = arith.constant 0 : i32
    return %c0_i32, %c0_i32_0 : i32, i32
  }
  func.func @transform_9(%arg0: i32, %arg1: i32, %arg2: i32) -> (i32, i32) {
    %c0_i32 = arith.constant 0 : i32
    %c0_i32_0 = arith.constant 0 : i32
    %c0_i32_1 = arith.constant 0 : i32
    return %c0_i32, %c0_i32_0 : i32, i32
  }
  func.func @transform_10(%arg0: i32, %arg1: i32, %arg2: i32) -> (i32, i32) {
    %c0_i32 = arith.constant 0 : i32
    %c0_i32_0 = arith.constant 0 : i32
    %c0_i32_1 = arith.constant 0 : i32
    return %c0_i32, %c0_i32_0 : i32, i32
  }
  func.func @transform_11(%arg0: i32, %arg1: i32, %arg2: i32) -> (i32, i32) {
    %c0_i32 = arith.constant 0 : i32
    %c0_i32_0 = arith.constant 0 : i32
    %c0_i32_1 = arith.constant 0 : i32
    return %c0_i32, %c0_i32_0 : i32, i32
  }
  func.func @transform_12(%arg0: i32, %arg1: i32, %arg2: i32) -> (i32, i32) {
    %c0_i32 = arith.constant 0 : i32
    %c0_i32_0 = arith.constant 0 : i32
    %c0_i32_1 = arith.constant 0 : i32
    return %c0_i32, %c0_i32_0 : i32, i32
  }
  func.func @transform_13(%arg0: i32, %arg1: i32, %arg2: i32) -> (i32, i32) {
    %c0_i32 = arith.constant 0 : i32
    %c0_i32_0 = arith.constant 0 : i32
    %c0_i32_1 = arith.constant 0 : i32
    return %c0_i32, %c0_i32_0 : i32, i32
  }
}

</mosaic_0001>

<bundles_post_ra>
// kernel: fused_forward.1
= control target key start
LH: loop header
LB: loop body
LE: loop exit
PB: predicated region body
PF: predicated region fallthrough
CT: control target
= control target key end

     0   :  { %s2603_s0 = inlined_call_operand.hbm [shape: bf16[128,128], index: 0, kind: input, shape index: {}]   ;;  %s2604_s1 = inlined_call_operand.vmem [shape: f32[128,1], index: 1, kind: input, shape index: {}]   ;;  %s2605_s2 = inlined_call_operand.vmem [shape: bf16[8,128], index: 2, kind: input, shape index: {}]   ;;  %s2606_s3 = inlined_call_operand.vmem [shape: f32[1,128], index: 3, kind: input, shape index: {}]   ;;  %s2607_s4 = inlined_call_operand.vmem [shape: f32[1,128], index: 4, kind: input, shape index: {}]   ;;  %s2608_s5 = inlined_call_operand.vmem [shape: bf16[2,128,128], index: 5, kind: input, shape index: {}]   ;;  %s2609_s6 = inlined_call_operand.vmem [shape: f32[2,1,128], index: 6, kind: input, shape index: {}]   ;;  %s2610_s7 = inlined_call_operand.hbm [shape: bf16[128,128], index: 7, kind: input, shape index: {}]   ;;  %s2611_s8 = inlined_call_operand.vmem [shape: f32[1,128], index: 8, kind: input, shape index: {}]   ;;  %s2612_s9 = inlined_call_operand.hbm [shape: bf16[128,128], index: 9, kind: input, shape index: {}]   ;;  %s2613_s10 = inlined_call_operand.vmem [shape: f32[1,128], index: 10, kind: input, shape index: {}]   ;;  %s2614_s11 = inlined_call_operand.hbm [shape: bf16[128,128], index: 11, kind: input, shape index: {}]   ;;  %s2615_s12 = inlined_call_operand.vmem [shape: f32[1,128], index: 12, kind: input, shape index: {}]   ;;  %s2616_s13 = inlined_call_operand.vmem [shape: f32[8,128], index: 13, kind: output, shape index: {}]  }
   0x1   :  { %2619 = sst [smem:[#allocation18_spill]] %s2610_s7 }
   0x2   :  { %2620 = sst [smem:[#allocation19_spill]] %s2616_s13 }
   0x3   :  { %18 = vsyncpa [#allocation6], 0 }
   0x4   :  { %19 = vsyncpa [#allocation8], 0 }
   0x5   :  { %20 = vsyncpa [#allocation11], 0  ;;  %s2275_s25 = smov 0   ;;  %s2277_s26 = smov 0  }
   0x6   :  { %s2279_s27 = smov 0  }
   0x7 LB: > { %2621 = sst [smem:[#allocation15_spill]] %s2191_s26  ;;  %s1675_s28 = sadd.s32 4294967295, %s2195_s27   ;;  %s2195_s27 = sphi %s2279_s27, %s26_s27   ;;  %s2191_s26 = sphi %s2277_s26, %s2633_s26   ;;  %s2187_s25 = sphi %s2275_s25, %s2632_s25  }
   0x8   : > { %2622 = sst [smem:[#allocation16_spill]] %s2195_s27  ;;  %p1676_p0 = scmp.ge.s32.totalorder %s2195_s27, 1 }
   0x9   : > { %p371_p1 = scmp.lt.s32.totalorder %s2195_s27, 3  ;;  %p2293_p2 = scmp.eq.s32.totalorder %s1675_s28, 0 }
   0xa   : > { %s2624_s7 = sld [smem:[#allocation18_spill]]  ;;  %s2197_s17 = smov [#allocation7]  }
   0xb   : > { %p2300_p3 = pnand %p1676_p0, %p371_p1  ;;  %s424_s18 = sshll.u32 %s2197_s17, 4  ;;  %s425_s18 = int_to_ptr.vmem [resolvable:$true] %s424_s18 }
   0xc   : > { %s45_s20 = sadd.s32 1, %s2191_s26  ;;  %s2198_s21 = smov 64  }
   0xd   : > { %p1979_p4 = pneg %p2300_p3  ;;  %p47_p6 = scmp.ge.s32.totalorder %s45_s20, 2 }
   0xe   : > { %s2199_s22 = smov 4   ;;  %s386_s28 = sshll.u32 %s2603_s0, 4  ;;  %s387_s28 = int_to_ptr.hbm [resolvable:$true] %s386_s28 }
   0xf   : > { %p2308_p5 = pnand %p2293_p2, %p1979_p4  ;;  %s2635_s20 = smov (%p47_p6, %s45_s20), 0 }
  0x10   : > { %s422_s15 = sshll.u32 %s2624_s7, 4  ;;  %2627 = sst [smem:[#allocation17_spill]] %s2635_s20  ;;  %s423_s15 = int_to_ptr.hbm [resolvable:$true] %s422_s15 }
  0x11   : > { %1985 = dma.hbm_to_vmem [thread:$0]  (!%p2308_p5), %s423_s15, 1024, %s425_s18, [#allocation8], %s2198_s21, %s2198_s21, %s2199_s22  }
  0x12   : > { %s2200_s30 = smov [#allocation5]   ;;  %s439_s26 = sshll.u32 %s2612_s9, 4  ;;  %s440_s26 = int_to_ptr.hbm [resolvable:$true] %s439_s26 }
  0x13   : > { %s388_s14 = sshll.u32 %s2200_s30, 4  ;;  %s2201_s27 = smov [#allocation9]   ;;  %s389_s14 = int_to_ptr.vmem [resolvable:$true] %s388_s14 }
  0x14   : > { %1982 = dma.hbm_to_vmem [thread:$0]  (!%p2308_p5), %s387_s28, 1024, %s389_s14, [#allocation6], %s2198_s21, %s2198_s21, %s2199_s22  }
  0x15   : > { %s441_s15 = sshll.u32 %s2201_s27, 4  ;;  %s456_s13 = sshll.u32 %s2614_s11, 4  ;;  %s442_s15 = int_to_ptr.vmem [resolvable:$true] %s441_s15  ;;  %s457_s13 = int_to_ptr.hbm [resolvable:$true] %s456_s13 }
  0x16   : > { %1988 = dma.hbm_to_vmem [thread:$0]  (!%p2308_p5), %s440_s26, 1024, %s442_s15, [#allocation8], %s2198_s21, %s2198_s21, %s2199_s22  }
  0x17   : > { %s2202_s23 = smov [#allocation10]   ;;  %491 = sbr.rel (%p2300_p3) target bundleno = 1173 (0x495), region = 72 }
  0x18   : > { %s458_s24 = sshll.u32 %s2202_s23, 4  ;;  %s459_s24 = int_to_ptr.vmem [resolvable:$true] %s458_s24 }
  0x19   : > { %1991 = dma.hbm_to_vmem [thread:$0]  (!%p2308_p5), %s457_s13, 1024, %s459_s24, [#allocation11], %s2198_s21, %s2198_s21, %s2199_s22  }
  0x1c   : > { %2174 = dma.done.wait (%p2293_p2), [#allocation6], 1024  }
  0x1d   : > { %2176 = vsyncadd (%p2293_p2), [#allocation6], 4294966272 }
  0x1e   : > { %2178 = dma.done.wait (%p2293_p2), [#allocation8], 2048  }
  0x1f   : > { %2180 = vsyncadd (%p2293_p2), [#allocation8], 4294965248 }
  0x20   : > { %2182 = dma.done.wait (%p2293_p2), [#allocation11], 1024  }
  0x21   : > { %2184 = vsyncadd (%p2293_p2), [#allocation11], 4294966272  ;;  %p569_p7 = scmp.lt.s32.totalorder %s2187_s25, 1  ;;  %p577_p8 = scmp.eq.s32.totalorder %s2187_s25, 0 }
  0x22   : > { %v2203_v0 = vmov (%p577_p8), 0.0  }
  0x23   : > { %s2349_s7 = scalar_select %p569_p7, %s2187_s25, 1  ;;  %586 = vst [vmem:[#allocation4] sm:$0xff] (%p577_p8), %v2203_v0 }
  0x24   : > { %585 = sbr.rel (!%p577_p8) target bundleno = 41 (0x29), region = 92 }
  0x25   : > { %s1857_s13 = sshll.u32 %s2349_s7, 6  ;;  %s576_s16 = scalar_lea.vmem %s2609_s6, %s2349_s7 }
  0x26   : > { %s2359_s21 = scalar_lea.vmem %s2608_s5, %s1857_s13 }
  0x29 PF: > { %v620_v1 = vld [vmem:[%s2604_s1 + $0x70] sm:$0xff]  ;;  %v618_v2 = vld [vmem:[%s2604_s1 + $0x60] sm:$0xff]  ;;  %v2204_v4 = vmov 0   ;;  %v619_v5 = vld [vmem:[%s2604_s1 + $0x68] sm:$0xff]  ;;  %s795_s15 = scalar_select %p577_p8, 1, 0 }
  0x2a   : > { %v616_v3 = vld [vmem:[%s2604_s1 + $0x50] sm:$0xff]  ;;  %2034 = vset.pattern.permute.xlu2 %v2204_v4  ;;  %2033 = vset.pattern.permute.xlu1 %v2204_v4  ;;  %v621_v6 = vld [vmem:[%s2604_s1 + $0x78] sm:$0xff]  ;;  %v615_v8 = vld [vmem:[%s2604_s1 + $0x48] sm:$0xff]  ;;  %p1756_p9 = scmp.ne.s32.totalorder %s2187_s25, 0 }
  0x2b   : > { %2032 = vset.pattern.permute.xlu0 %v2204_v4  ;;  %685 = vperm.xlu1 %2033, %v618_v2   ;;  %v617_v7 = vld [vmem:[%s2604_s1 + $0x58] sm:$0xff]  ;;  %v614_v9 = vld [vmem:[%s2604_s1 + $0x40] sm:$0xff]  ;;  %v612_v10 = vld [vmem:[%s2604_s1 + $0x30] sm:$0xff]  ;;  %v796_v38 = vstv %s795_s15 }
  0x2c   : > { %695 = vperm.xlu0 %2032, %v620_v1   ;;  %675 = vperm.xlu2 %2034, %v616_v3   ;;  %v610_v11 = vld [vmem:[%s2604_s1 + $0x20] sm:$0xff]  ;;  %v613_v12 = vld [vmem:[%s2604_s1 + $0x38] sm:$0xff]  ;;  %v611_v13 = vld [vmem:[%s2604_s1 + $0x28] sm:$0xff]  ;;  %vm2435_vm0 = vcmp.eq.s32.totalorder %v796_v38, 1 }
  0x2d   : > { %v609_v14 = vld [vmem:[%s2604_s1 + $0x18] sm:$0xff]  ;;  %v608_v15 = vld [vmem:[%s2604_s1 + $0x10] sm:$0xff]  ;;  %v606_v16 = vld [vmem:[%s2604_s1] sm:$0xff] }
  0x2e   : > { %v607_v17 = vld [vmem:[%s2604_s1 + $0x8] sm:$0xff]  ;;  %v2414_v19 = vld [vmem:[%s2606_s3] ss:$0 sm:$0xff]  ;;  %v793_v45 = vld [vmem:[#allocation3 + $0x38] sm:$0xf] }
  0x2f   : > { %v2419_v21 = vld [vmem:[%s2607_s4] ss:$0 sm:$0xff]  ;;  %v794_v50 = vld [vmem:[#allocation3 + $0x3c] sm:$0xf]  ;;  %v792_v51 = vld [vmem:[#allocation3 + $0x34] sm:$0xf] }
  0x30   : > { %v791_v60 = vld [vmem:[#allocation3 + $0x30] sm:$0xf] }
  0x31   : > { %v1873_v46 = vld [vmem:[%s2359_s21 + $0x30] sm:$0xff] }
  0x33   : > { %690 = vperm.xlu1 %2033, %v619_v5   ;;  %v789_v5 = vld [vmem:[#allocation3 + $0x28] sm:$0xf] }
  0x34   : > { %700 = vperm.xlu0 %2032, %v621_v6   ;;  %680 = vperm.xlu2 %2034, %v617_v7   ;;  %v790_v6 = vld [vmem:[#allocation3 + $0x2c] sm:$0xf] }
  0x3b   : > { %670 = vperm.xlu1 %2033, %v615_v8  }
  0x3c   : > { %665 = vperm.xlu0 %2032, %v614_v9   ;;  %655 = vperm.xlu2 %2034, %v612_v10  }
  0x43   : > { %645 = vperm.xlu1 %2033, %v610_v11  }
  0x44   : > { %660 = vperm.xlu0 %2032, %v613_v12   ;;  %650 = vperm.xlu2 %2034, %v611_v13  }
  0x4b   : > { %640 = vperm.xlu1 %2033, %v609_v14  }
  0x4c   : > { %635 = vperm.xlu0 %2032, %v608_v15   ;;  %625 = vperm.xlu2 %2034, %v606_v16  }
  0x54   : > { %630 = vperm.xlu0 %2032, %v607_v17  }
  0x86   : > { %v676_v18 = vpop.permute.xlu2 %675 }
  0x87   : > { %v716_v27 = vmul.f32 %v2414_v19, %v676_v18 }
  0x89   : > { %v736_v32 = vadd.f32 %v2419_v21, %v716_v27 }
  0x8b   : > { %v752_v43 = vmax.f32 %v736_v32, 0.0 }
  0x8d   : > { %v768_v57 = vpack.c.bf16 %v752_v43, %v752_v43 }
  0x8e   : > { %v681_v20 = vpop.permute.xlu2 %680 }
  0x8f   : > { %v717_v28 = vmul.f32 %v2414_v19, %v681_v20  ;;  %v808_v15 = vsel %vm2435_vm0, %v768_v57, %v789_v5  ;;  %v787_v20 = vld [vmem:[#allocation3 + $0x20] sm:$0xf] }
  0x91   : > { %v737_v36 = vadd.f32 %v2419_v21, %v717_v28 }
  0x93   : > { %v753_v47 = vmax.f32 %v737_v36, 0.0 }
  0x95   : > { %v769_v61 = vpack.c.bf16 %v753_v47, %v753_v47 }
  0x96   : > { %v656_v33 = vpop.permute.xlu2 %655 }
  0x97   : > { %v712_v52 = vmul.f32 %v2414_v19, %v656_v33  ;;  %v809_v16 = vsel %vm2435_vm0, %v769_v61, %v790_v6 }
  0x99   : > { %v732_v7 = vadd.f32 %v2419_v21, %v712_v52 }
  0x9d   : > { %v686_v22 = vpop.permute.xlu1 %685 }
  0x9e   : > { %v696_v23 = vpop.permute.xlu0 %695  ;;  %v718_v26 = vmul.f32 %v2414_v19, %v686_v22  ;;  %v651_v1 = vpop.permute.xlu2 %650  ;;  %v788_v22 = vld [vmem:[#allocation3 + $0x24] sm:$0xf] }
  0x9f   : > { %v720_v24 = vmul.f32 %v2414_v19, %v696_v23  ;;  %v711_v8 = vmul.f32 %v2414_v19, %v651_v1  ;;  %v748_v23 = vmax.f32 %v732_v7, 0.0 }
  0xa0   : > { %v738_v30 = vadd.f32 %v2419_v21, %v718_v26 }
  0xa1   : > { %v740_v25 = vadd.f32 %v2419_v21, %v720_v24  ;;  %v731_v24 = vadd.f32 %v2419_v21, %v711_v8  ;;  %v764_v36 = vpack.c.bf16 %v748_v23, %v748_v23  ;;  %v782_v8 = vld [vmem:[#allocation3 + $0xc] sm:$0xf] }
  0xa2   : > { %v754_v41 = vmax.f32 %v738_v30, 0.0  ;;  %v920_v30 = vunpack.c.l.b16 %v808_v15 }
  0xa3   : > { %v756_v29 = vmax.f32 %v740_v25, 0.0 }
  0xa4   : > { %v770_v53 = vpack.c.bf16 %v754_v41, %v754_v41 }
  0xa5   : > { %v691_v31 = vpop.permute.xlu1 %690  ;;  %v772_v40 = vpack.c.bf16 %v756_v29, %v756_v29 }
  0xa6   : > { %v701_v34 = vpop.permute.xlu0 %700  ;;  %v719_v35 = vmul.f32 %v2414_v19, %v691_v31  ;;  %v810_v10 = vsel %vm2435_vm0, %v770_v53, %v791_v60  ;;  %v921_v31 = vunpack.c.l.b16 %v809_v16 }
  0xa7   : > { %v721_v37 = vmul.f32 %v2414_v19, %v701_v34  ;;  %v812_v56 = vsel %vm2435_vm0, %v772_v40, %v793_v45  ;;  %v922_v18 = vunpack.c.l.b16 %v810_v10 }
  0xa8   : > { %v739_v39 = vadd.f32 %v2419_v21, %v719_v35  ;;  %v924_v3 = vunpack.c.l.b16 %v812_v56  ;;  %v931_v41 = vpack.c.b16 %v921_v31, %v920_v30 }
  0xa9   : > { %v741_v42 = vadd.f32 %v2419_v21, %v721_v37  ;;  %v747_v37 = vmax.f32 %v731_v24, 0.0 }
  0xaa   : > { %v755_v44 = vmax.f32 %v739_v39, 0.0  ;;  %v626_v39 = vpop.permute.xlu2 %625 }
  0xab   : > { %v757_v48 = vmax.f32 %v741_v42, 0.0 }
  0xac   : > { %v771_v49 = vpack.c.bf16 %v755_v44, %v755_v44  ;;  %v785_v44 = vld [vmem:[#allocation3 + $0x18] sm:$0xf] }
  0xad   : > { %v773_v54 = vpack.c.bf16 %v757_v48, %v757_v48  ;;  %v671_v55 = vpop.permute.xlu1 %670  ;;  %v786_v48 = vld [vmem:[#allocation3 + $0x1c] sm:$0xf] }
  0xae   : > { %v715_v58 = vmul.f32 %v2414_v19, %v671_v55  ;;  %v666_v59 = vpop.permute.xlu0 %665  ;;  %v811_v0 = vsel %vm2435_vm0, %v771_v49, %v792_v51  ;;  %v783_v49 = vld [vmem:[#allocation3 + $0x10] sm:$0xf]  ;;  %v706_v51 = vmul.f32 %v2414_v19, %v626_v39  ;;  %v1871_v39 = vld [vmem:[%s2359_s21 + $0x20] sm:$0xff] }
  0xaf   : > { %v714_v62 = vmul.f32 %v2414_v19, %v666_v59  ;;  %v813_v63 = vsel %vm2435_vm0, %v773_v54, %v794_v50  ;;  %v923_v13 = vunpack.c.l.b16 %v811_v0  ;;  %v763_v50 = vpack.c.bf16 %v747_v37, %v747_v37  ;;  %v1874_v37 = vld [vmem:[%s2359_s21 + $0x38] sm:$0xff] }
  0xb0   : > { %v735_v2 = vadd.f32 %v2419_v21, %v715_v58  ;;  %v925_v4 = vunpack.c.l.b16 %v813_v63  ;;  %v804_v54 = vsel %vm2435_vm0, %v764_v36, %v785_v44  ;;  %v784_v58 = vld [vmem:[#allocation3 + $0x14] sm:$0xf]  ;;  %v726_v1 = vadd.f32 %v2419_v21, %v706_v51  ;;  %1118 = vmatpush.bf16.msra.mxu1 %v1874_v37  ;;  %1955 = vmatpush.bf16.msra.mxu3 %v1874_v37  ;;  %v1866_v44 = vld [vmem:[#allocation5 + $0x38] sm:$0xff] }
  0xb1   : > { %v734_v9 = vadd.f32 %v2419_v21, %v714_v62  ;;  %v932_v29 = vpack.c.b16 %v923_v13, %v922_v18  ;;  %v916_v63 = vunpack.c.l.b16 %v804_v54  ;;  %v1864_v36 = vld [vmem:[#allocation5 + $0x28] sm:$0xff] }
  0xb2   : > { %v751_v11 = vmax.f32 %v735_v2, 0.0  ;;  %v933_v12 = vpack.c.b16 %v925_v4, %v924_v3  ;;  %v803_v3 = vsel %vm2435_vm0, %v763_v50, %v784_v58 }
  0xb3   : > { %v750_v14 = vmax.f32 %v734_v9, 0.0  ;;  %v915_v10 = vunpack.c.l.b16 %v803_v3 }
  0xb4   : > { %v767_v17 = vpack.c.bf16 %v751_v11, %v751_v11  ;;  %942 = vmatpush.bf16.msra.mxu0 %v933_v12  ;;  %1947 = vmatpush.bf16.msra.mxu2 %v933_v12  ;;  %v781_v11 = vld [vmem:[#allocation3 + $0x8] sm:$0xf]  ;;  %v742_v12 = vmax.f32 %v726_v1, 0.0 }
  0xb5   : > { %v766_v25 = vpack.c.bf16 %v750_v14, %v750_v14  ;;  %v646_v26 = vpop.permute.xlu1 %645  ;;  %1119 = vmatpush.bf16.msra.mxu1 %v1873_v46  ;;  %1956 = vmatpush.bf16.msra.mxu3 %v1873_v46 }
  0xb6   : > { %v661_v27 = vpop.permute.xlu0 %660  ;;  %v710_v28 = vmul.f32 %v2414_v19, %v646_v26  ;;  %v807_v34 = vsel %vm2435_vm0, %v767_v17, %v788_v22  ;;  %v758_v23 = vpack.c.bf16 %v742_v12, %v742_v12  ;;  %v779_v26 = vld [vmem:[#allocation3] sm:$0xf] }
  0xb7   : > { %v713_v32 = vmul.f32 %v2414_v19, %v661_v27  ;;  %v806_v33 = vsel %vm2435_vm0, %v766_v25, %v787_v20  ;;  %v919_v43 = vunpack.c.l.b16 %v807_v34  ;;  %v1863_v34 = vld [vmem:[#allocation5 + $0x20] sm:$0xff] }
  0xb8   : > { %v730_v35 = vadd.f32 %v2419_v21, %v710_v28  ;;  %943 = vmatpush.bf16.msra.mxu0 %v932_v29  ;;  %1948 = vmatpush.bf16.msra.mxu2 %v932_v29  ;;  %v918_v42 = vunpack.c.l.b16 %v806_v33  ;;  %v780_v28 = vld [vmem:[#allocation3 + $0x4] sm:$0xf] }
  0xb9   : > { %v733_v38 = vadd.f32 %v2419_v21, %v713_v32 }
  0xba   : > { %v746_v40 = vmax.f32 %v730_v35, 0.0  ;;  %v930_v57 = vpack.c.b16 %v919_v43, %v918_v42  ;;  %v1860_v35 = vld [vmem:[#allocation5 + $0x8] sm:$0xff]  ;;  %v1870_v42 = vld [vmem:[%s2359_s21 + $0x18] sm:$0xff]  ;;  %v1862_v43 = vld [vmem:[#allocation5 + $0x18] sm:$0xff] }
  0xbb   : > { %v749_v45 = vmax.f32 %v733_v38, 0.0  ;;  %v1872_v38 = vld [vmem:[%s2359_s21 + $0x28] sm:$0xff] }
  0xbc   : > { %v762_v47 = vpack.c.bf16 %v746_v40, %v746_v40  ;;  %944 = vmatpush.bf16.msra.mxu0 %v931_v41  ;;  %1949 = vmatpush.bf16.msra.mxu2 %v931_v41  ;;  %v1861_v40 = vld [vmem:[#allocation5 + $0x10] sm:$0xff] }
  0xbd   : > { %v765_v52 = vpack.c.bf16 %v749_v45, %v749_v45  ;;  %v641_v53 = vpop.permute.xlu1 %640  ;;  %1120 = vmatpush.bf16.msra.mxu1 %v1872_v38  ;;  %1957 = vmatpush.bf16.msra.mxu3 %v1872_v38  ;;  %v1865_v41 = vld [vmem:[#allocation5 + $0x30] sm:$0xff]  ;;  %v1869_v45 = vld [vmem:[%s2359_s21 + $0x10] sm:$0xff] }
  0xbe   : > { %v709_v55 = vmul.f32 %v2414_v19, %v641_v53  ;;  %v636_v56 = vpop.permute.xlu0 %635  ;;  %v802_v61 = vsel %vm2435_vm0, %v762_v47, %v783_v49  ;;  %v1868_v47 = vld [vmem:[%s2359_s21 + $0x8] sm:$0xff] }
  0xbf   : > { %v708_v59 = vmul.f32 %v2414_v19, %v636_v56  ;;  %v805_v60 = vsel %vm2435_vm0, %v765_v52, %v786_v48  ;;  %v914_v6 = vunpack.c.l.b16 %v802_v61  ;;  %v1867_v48 = vld [vmem:[%s2359_s21] sm:$0xff] }
  0xc0   : > { %v729_v62 = vadd.f32 %v2419_v21, %v709_v55  ;;  %945 = vmatpush.bf16.msra.mxu0 %v930_v57  ;;  %1950 = vmatpush.bf16.msra.mxu2 %v930_v57  ;;  %v917_v0 = vunpack.c.l.b16 %v805_v60 }
  0xc1   : > { %v728_v2 = vadd.f32 %v2419_v21, %v708_v59  ;;  %v928_v15 = vpack.c.b16 %v915_v10, %v914_v6  ;;  %1121 = vmatpush.bf16.msra.mxu1 %v1871_v39  ;;  %1958 = vmatpush.bf16.msra.mxu3 %v1871_v39 }
  0xc2   : > { %v745_v4 = vmax.f32 %v729_v62, 0.0  ;;  %v929_v5 = vpack.c.b16 %v917_v0, %v916_v63 }
  0xc3   : > { %v744_v7 = vmax.f32 %v728_v2, 0.0 }
  0xc4   : > { %v761_v9 = vpack.c.bf16 %v745_v4, %v745_v4  ;;  %946 = vmatpush.bf16.msra.mxu0 %v929_v5  ;;  %1951 = vmatpush.bf16.msra.mxu2 %v929_v5 }
  0xc5   : > { %v760_v13 = vpack.c.bf16 %v744_v7, %v744_v7  ;;  %1122 = vmatpush.bf16.msra.mxu1 %v1870_v42  ;;  %1959 = vmatpush.bf16.msra.mxu3 %v1870_v42 }
  0xc6   : > { %v631_v14 = vpop.permute.xlu0 %630  ;;  %v801_v16 = vsel %vm2435_vm0, %v761_v9, %v782_v8  ;;  %v2037_v9 = vld [vmem:[%s576_s16] ss:$0 sm:$0xff] }
  0xc7   : > { %v707_v17 = vmul.f32 %v2414_v19, %v631_v14  ;;  %v800_v18 = vsel %vm2435_vm0, %v760_v13, %v781_v11  ;;  %v913_v20 = vunpack.c.l.b16 %v801_v16  ;;  %v798_v19 = vsel %vm2435_vm0, %v758_v23, %v779_v26 }
  0xc8   : > { %947 = vmatpush.bf16.msra.mxu0 %v928_v15  ;;  %1952 = vmatpush.bf16.msra.mxu2 %v928_v15  ;;  %v912_v22 = vunpack.c.l.b16 %v800_v18  ;;  %v910_v31 = vunpack.c.l.b16 %v798_v19 }
  0xc9   : > { %v727_v24 = vadd.f32 %v2419_v21, %v707_v17  ;;  %v1859_v21 = vld [vmem:[#allocation5] sm:$0xff]  ;;  %1123 = vmatpush.bf16.msra.mxu1 %v1869_v45  ;;  %1960 = vmatpush.bf16.msra.mxu3 %v1869_v45 }
  0xca   : > { %v927_v25 = vpack.c.b16 %v913_v20, %v912_v22 }
  0xcb   : > { %v743_v27 = vmax.f32 %v727_v24, 0.0 }
  0xcc   : > { %948 = vmatpush.bf16.msra.mxu0 %v927_v25  ;;  %1953 = vmatpush.bf16.msra.mxu2 %v927_v25 }
  0xcd   : > { %v759_v29 = vpack.c.bf16 %v743_v27, %v743_v27  ;;  %1124 = vmatpush.bf16.msra.mxu1 %v1868_v47  ;;  %1961 = vmatpush.bf16.msra.mxu3 %v1868_v47 }
  0xcf   : > { %v799_v30 = vsel %vm2435_vm0, %v759_v29, %v780_v28 }
  0xd0   : > { %v911_v32 = vunpack.c.l.b16 %v799_v30 }
  0xd1   : > { %1125 = vmatpush.bf16.msra.mxu1 %v1867_v48  ;;  %1962 = vmatpush.bf16.msra.mxu3 %v1867_v48 }
  0xd2   : > { %v926_v33 = vpack.c.b16 %v911_v32, %v910_v31 }
  0xd4   : > { %949 = vmatpush.bf16.msra.mxu0 %v926_v33  ;;  %1954 = vmatpush.bf16.msra.mxu2 %v926_v33 }
  0xd7   : > { %950 = vmatmul.bf16.vlgmr.msra.gmra.mxu0 %v1859_v21  ;;  %970 = vmatmul.bf16.vlgmr.msra.gmra.mxu2 %v1863_v34 }
  0xe7   : > { %955 = vmatmul.bf16.gmra.mxu0 %v1860_v35  ;;  %975 = vmatmul.bf16.gmra.mxu2 %v1864_v36 }
  0xf7   : > { %960 = vmatmul.bf16.gmra.mxu0 %v1861_v40  ;;  %980 = vmatmul.bf16.gmra.mxu2 %v1865_v41 }
 0x107   : > { %965 = vmatmul.bf16.gmra.mxu0 %v1862_v43  ;;  %985 = vmatmul.bf16.gmra.mxu2 %v1866_v44 }
 0x154   : > { %v951_v49 = vpop.f32.mrf.mxu0 }
 0x15a   : > { %v971_v50 = vpop.f32.mrf.mxu2 }
 0x15c   : > { %v953_v51 = vpop.f32.mrf.mxu0 }
 0x15d   : > { %v1059_v52 = vpack.c.bf16 %v953_v51, %v951_v49 }
 0x15f   : > { %1126 = vmatmul.bf16.vlgmr.msra.gmra.mxu1 %v1059_v52 }
 0x162   : > { %v973_v53 = vpop.f32.mrf.mxu2 }
 0x163   : > { %v1063_v54 = vpack.c.bf16 %v973_v53, %v971_v50 }
 0x164   : > { %v956_v55 = vpop.f32.mrf.mxu0 }
 0x165   : > { %1146 = vmatmul.bf16.vlgmr.msra.gmra.mxu3 %v1063_v54 }
 0x16a   : > { %v976_v56 = vpop.f32.mrf.mxu2 }
 0x16c   : > { %v958_v57 = vpop.f32.mrf.mxu0 }
 0x16d   : > { %v1060_v58 = vpack.c.bf16 %v958_v57, %v956_v55 }
 0x16f   : > { %1131 = vmatmul.bf16.gmra.mxu1 %v1060_v58 }
 0x172   : > { %v978_v59 = vpop.f32.mrf.mxu2 }
 0x173   : > { %v1064_v60 = vpack.c.bf16 %v978_v59, %v976_v56 }
 0x174   : > { %v961_v61 = vpop.f32.mrf.mxu0 }
 0x175   : > { %1151 = vmatmul.bf16.gmra.mxu3 %v1064_v60 }
 0x17a   : > { %v981_v62 = vpop.f32.mrf.mxu2 }
 0x17c   : > { %v963_v63 = vpop.f32.mrf.mxu0 }
 0x17d   : > { %v1061_v0 = vpack.c.bf16 %v963_v63, %v961_v61 }
 0x17f   : > { %1136 = vmatmul.bf16.gmra.mxu1 %v1061_v0 }
 0x182   : > { %v983_v1 = vpop.f32.mrf.mxu2 }
 0x183   : > { %v1065_v2 = vpack.c.bf16 %v983_v1, %v981_v62 }
 0x184   : > { %v966_v3 = vpop.f32.mrf.mxu0 }
 0x185   : > { %1156 = vmatmul.bf16.gmra.mxu3 %v1065_v2 }
 0x18a   : > { %v986_v4 = vpop.f32.mrf.mxu2 }
 0x18c   : > { %v968_v5 = vpop.f32.mrf.mxu0 }
 0x18d   : > { %v1062_v6 = vpack.c.bf16 %v968_v5, %v966_v3 }
 0x18f   : > { %1141 = vmatmul.bf16.gmra.mxu1 %v1062_v6 }
 0x192   : > { %v988_v7 = vpop.f32.mrf.mxu2 }
 0x193   : > { %v1066_v8 = vpack.c.bf16 %v988_v7, %v986_v4 }
 0x195   : > { %1161 = vmatmul.bf16.gmra.mxu3 %v1066_v8 }
 0x1dc   : > { %v1127_v10 = vpop.f32.mrf.mxu1 }
 0x1dd   : > { %v1128_v11 = vadd.f32 %v2037_v9, %v1127_v10 }
 0x1df   : > { %v2504_v12 = vmax.f32 %v1128_v11, 0.0 }
 0x1e1   : > { %v1183_v13 = vpack.c.bf16 %v2504_v12, %v2504_v12 }
 0x1e4   : > { %v1129_v14 = vpop.f32.mrf.mxu1 }
 0x1e5   : > { %v1130_v15 = vadd.f32 %v2037_v9, %v1129_v14 }
 0x1e7   : > { %v2508_v16 = vmax.f32 %v1130_v15, 0.0 }
 0x1e8   : > { %v1147_v17 = vpop.f32.mrf.mxu3 }
 0x1e9   : > { %v1184_v18 = vpack.c.bf16 %v2508_v16, %v2508_v16  ;;  %v1148_v20 = vadd.f32 %v2037_v9, %v1147_v17 }
 0x1eb   : > { %v2512_v22 = vmax.f32 %v1148_v20, 0.0 }
 0x1ec   : > { %v1132_v23 = vpop.f32.mrf.mxu1 }
 0x1ed   : > { %v1191_v24 = vpack.c.bf16 %v2512_v22, %v2512_v22  ;;  %v1133_v25 = vadd.f32 %v2037_v9, %v1132_v23 }
 0x1ef   : > { %v2516_v26 = vmax.f32 %v1133_v25, 0.0 }
 0x1f0   : > { %v1149_v27 = vpop.f32.mrf.mxu3 }
 0x1f1   : > { %v1185_v28 = vpack.c.bf16 %v2516_v26, %v2516_v26  ;;  %v1150_v29 = vadd.f32 %v2037_v9, %v1149_v27 }
 0x1f3   : > { %v2520_v19 = vmax.f32 %v1150_v29, 0.0 }
 0x1f4   : > { %v1134_v30 = vpop.f32.mrf.mxu1 }
 0x1f5   : > { %v1192_v31 = vpack.c.bf16 %v2520_v19, %v2520_v19  ;;  %v1135_v32 = vadd.f32 %v2037_v9, %v1134_v30 }
 0x1f7   : > { %v2524_v33 = vmax.f32 %v1135_v32, 0.0 }
 0x1f8   : > { %v1152_v21 = vpop.f32.mrf.mxu3 }
 0x1f9   : > { %v1186_v34 = vpack.c.bf16 %v2524_v33, %v2524_v33  ;;  %v1153_v35 = vadd.f32 %v2037_v9, %v1152_v21 }
 0x1fb   : > { %v2528_v36 = vmax.f32 %v1153_v35, 0.0 }
 0x1fc   : > { %v1137_v37 = vpop.f32.mrf.mxu1 }
 0x1fd   : > { %v1193_v46 = vpack.c.bf16 %v2528_v36, %v2528_v36  ;;  %v1138_v38 = vadd.f32 %v2037_v9, %v1137_v37 }
 0x1ff   : > { %v2532_v39 = vmax.f32 %v1138_v38, 0.0 }
 0x200   : > { %v1154_v40 = vpop.f32.mrf.mxu3 }
 0x201   : > { %v1187_v41 = vpack.c.bf16 %v2532_v39, %v2532_v39  ;;  %v1155_v42 = vadd.f32 %v2037_v9, %v1154_v40 }
 0x203   : > { %v1178_v43 = vmax.f32 %v1155_v42, 0.0 }
 0x204   : > { %v1139_v44 = vpop.f32.mrf.mxu1 }
 0x205   : > { %v1194_v45 = vpack.c.bf16 %v1178_v43, %v1178_v43  ;;  %v1140_v47 = vadd.f32 %v2037_v9, %v1139_v44 }
 0x207   : > { %v2536_v48 = vmax.f32 %v1140_v47, 0.0 }
 0x208   : > { %v1157_v49 = vpop.f32.mrf.mxu3 }
 0x209   : > { %v1188_v50 = vpack.c.bf16 %v2536_v48, %v2536_v48  ;;  %v1158_v51 = vadd.f32 %v2037_v9, %v1157_v49 }
 0x20b   : > { %v1179_v52 = vmax.f32 %v1158_v51, 0.0 }
 0x20c   : > { %v1142_v53 = vpop.f32.mrf.mxu1 }
 0x20d   : > { %v1195_v54 = vpack.c.bf16 %v1179_v52, %v1179_v52  ;;  %v1143_v55 = vadd.f32 %v2037_v9, %v1142_v53 }
 0x20f   : > { %v1173_v56 = vmax.f32 %v1143_v55, 0.0 }
 0x210   : > { %v1159_v57 = vpop.f32.mrf.mxu3 }
 0x211   : > { %v1189_v58 = vpack.c.bf16 %v1173_v56, %v1173_v56  ;;  %v1160_v59 = vadd.f32 %v2037_v9, %v1159_v57 }
 0x213   : > { %v1180_v60 = vmax.f32 %v1160_v59, 0.0 }
 0x214   : > { %v1144_v61 = vpop.f32.mrf.mxu1 }
 0x215   : > { %v1196_v62 = vpack.c.bf16 %v1180_v60, %v1180_v60  ;;  %v1145_v63 = vadd.f32 %v2037_v9, %v1144_v61 }
 0x217   : > { %v1174_v0 = vmax.f32 %v1145_v63, 0.0 }
 0x218   : > { %v1162_v1 = vpop.f32.mrf.mxu3 }
 0x219   : > { %v1190_v2 = vpack.c.bf16 %v1174_v0, %v1174_v0  ;;  %v1163_v3 = vadd.f32 %v2037_v9, %v1162_v1 }
 0x21b   : > { %v1181_v4 = vmax.f32 %v1163_v3, 0.0 }
 0x21d   : > { %v1197_v5 = vpack.c.bf16 %v1181_v4, %v1181_v4 }
 0x220   : > { %v1164_v6 = vpop.f32.mrf.mxu3 }
 0x221   : > { %v1165_v7 = vadd.f32 %v2037_v9, %v1164_v6  ;;  %1201 = sbr.rel (%p1756_p9) target bundleno = 560 (0x230), region = 104 }
 0x223   : > { %v1182_v8 = vmax.f32 %v1165_v7, 0.0 }
 0x225   : > { %v1198_v10 = vpack.c.bf16 %v1182_v8, %v1182_v8 }
 0x226   : > { %v1903_v11 = vpack.c.bf16 %v2508_v16, %v2504_v12  ;;  %v1908_v14 = vpack.c.bf16 %v2524_v33, %v2516_v26  ;;  %v1913_v15 = vpack.c.bf16 %v2536_v48, %v2532_v39  ;;  %v1918_v17 = vpack.c.bf16 %v1174_v0, %v1173_v56 }
 0x227   : > { %v1923_v20 = vpack.c.bf16 %v2520_v19, %v2512_v22  ;;  %v1928_v9 = vpack.c.bf16 %v1178_v43, %v2528_v36  ;;  %v1933_v23 = vpack.c.bf16 %v1180_v60, %v1179_v52  ;;  %v1938_v25 = vpack.c.bf16 %v1182_v8, %v1181_v4 }
 0x228   : > { %1904 = vst [vmem:[#allocation3] sm:$0xff] %v1903_v11  }
 0x229   : > { %1940 = vst [vmem:[#allocation3 + $0x8] sm:$0xff] %v1908_v14  }
 0x22a   : > { %1941 = vst [vmem:[#allocation3 + $0x10] sm:$0xff] %v1913_v15  }
 0x22b   : > { %1942 = vst [vmem:[#allocation3 + $0x18] sm:$0xff] %v1918_v17  }
 0x22c   : > { %1943 = vst [vmem:[#allocation3 + $0x20] sm:$0xff] %v1923_v20  }
 0x22d   : > { %1944 = vst [vmem:[#allocation3 + $0x28] sm:$0xff] %v1928_v9  }
 0x22e   : > { %1945 = vst [vmem:[#allocation3 + $0x30] sm:$0xff] %v1933_v23  }
 0x22f   : > { %1946 = vst [vmem:[#allocation3 + $0x38] sm:$0xff] %v1938_v25  }
 0x230 PF: > { %p1757_p10 = scmp.ne.s32.totalorder %s2187_s25, 1 }
 0x232   : > { %1226 = sbr.rel (%p1757_p10) target bundleno = 736 (0x2e0), region = 108 }
 0x237   : > { %v1259_v27 = vunpack.c.l.b16 %v1197_v5  ;;  %v1260_v29 = vunpack.c.l.b16 %v1198_v10  ;;  %v1257_v30 = vunpack.c.l.b16 %v1195_v54  ;;  %v1258_v32 = vunpack.c.l.b16 %v1196_v62  ;;  %v1228_v26 = vld [vmem:[%s2605_s2] sm:$0xf] }
 0x238   : > { %v1255_v37 = vunpack.c.l.b16 %v1193_v46  ;;  %v1256_v38 = vunpack.c.l.b16 %v1194_v45  ;;  %v1253_v42 = vunpack.c.l.b16 %v1191_v24  ;;  %v1254_v43 = vunpack.c.l.b16 %v1192_v31 }
 0x239   : > { %v1268_v21 = vpack.c.b16 %v1260_v29, %v1259_v27  ;;  %v1267_v35 = vpack.c.b16 %v1258_v32, %v1257_v30  ;;  %v1251_v47 = vunpack.c.l.b16 %v1189_v58  ;;  %v1252_v49 = vunpack.c.l.b16 %v1190_v2 }
 0x23a   : > { %v1266_v40 = vpack.c.b16 %v1256_v38, %v1255_v37  ;;  %v1265_v44 = vpack.c.b16 %v1254_v43, %v1253_v42  ;;  %v1249_v36 = vunpack.c.l.b16 %v1187_v41  ;;  %v1250_v46 = vunpack.c.l.b16 %v1188_v50 }
 0x23b   : > { %1277 = vmatpush.bf16.msra.mxu0 %v1268_v21  ;;  %v1264_v51 = vpack.c.b16 %v1252_v49, %v1251_v47  ;;  %v1247_v24 = vunpack.c.l.b16 %v1185_v28  ;;  %v1248_v19 = vunpack.c.l.b16 %v1186_v34  ;;  %v1245_v39 = vunpack.c.l.b16 %v1183_v13  ;;  %v1227_v28 = vld [vmem:[#allocation4] sm:$0xff] }
 0x23c   : > { %v1263_v22 = vpack.c.b16 %v1250_v46, %v1249_v36  ;;  %v1246_v41 = vunpack.c.l.b16 %v1184_v18 }
 0x23d   : > { %v1262_v31 = vpack.c.b16 %v1248_v19, %v1247_v24 }
 0x23e   : > { %v1261_v45 = vpack.c.b16 %v1246_v41, %v1245_v39 }
 0x23f   : > { %1278 = vmatpush.bf16.msra.mxu0 %v1267_v35 }
 0x243   : > { %1279 = vmatpush.bf16.msra.mxu0 %v1266_v40 }
 0x247   : > { %1280 = vmatpush.bf16.msra.mxu0 %v1265_v44 }
 0x24b   : > { %1281 = vmatpush.bf16.msra.mxu0 %v1264_v51 }
 0x24f   : > { %1282 = vmatpush.bf16.msra.mxu0 %v1263_v22 }
 0x253   : > { %1283 = vmatpush.bf16.msra.mxu0 %v1262_v31 }
 0x257   : > { %1284 = vmatpush.bf16.msra.mxu0 %v1261_v45 }
 0x25a   : > { %1285 = vmatmul.bf16.vlgmr.msra.gmra.mxu0 %v1228_v26 }
 0x2d7   : > { %v1286_v33 = vpop.f32.mrf.mxu0 }
 0x2d8   : > { %v1290_v34 = vadd.f32 %v1286_v33, %v1227_v28 }
 0x2da   : > { %1291 = vst [vmem:[#allocation4] sm:$0xff] %v1290_v34 }
 0x2df   : > { %v1288_v48 = vpop.f32.mrf.mxu0 }
 0x2e0 PF: > { %p1292_p11 = scmp.eq.s32.totalorder %s2187_s25, 1 }
 0x2e1   : > { %v1883_v12 = vld [vmem:[#allocation7 + $0x38] sm:$0xff] (%p1292_p11)  ;;  %v1882_v13 = vld [vmem:[#allocation7 + $0x30] sm:$0xff] (%p1292_p11)  ;;  %v1881_v50 = vld [vmem:[#allocation7 + $0x28] sm:$0xff] (%p1292_p11)  ;;  %s2630_s29 = sld [smem:[#allocation19_spill]] (%p1292_p11) }
 0x2e2   : > { %1296 = sbr.rel (!%p1292_p11) target bundleno = 1173 (0x495), region = 112  ;;  %1367 = vmatpush.bf16.msra.mxu0 (%p1292_p11), %v1883_v12  ;;  %v1891_v16 = vld [vmem:[#allocation9 + $0x38] sm:$0xff] (%p1292_p11)  ;;  %v1890_v18 = vld [vmem:[#allocation9 + $0x30] sm:$0xff] (%p1292_p11)  ;;  %v1889_v52 = vld [vmem:[#allocation9 + $0x28] sm:$0xff] (%p1292_p11) }
 0x2e3   : > { %1450 = vmatpush.bf16.msra.mxu1 (%p1292_p11), %v1891_v16  ;;  %v1880_v53 = vld [vmem:[#allocation7 + $0x20] sm:$0xff] (%p1292_p11)  ;;  %v1879_v55 = vld [vmem:[#allocation7 + $0x18] sm:$0xff] (%p1292_p11)  ;;  %v1878_v57 = vld [vmem:[#allocation7 + $0x10] sm:$0xff] (%p1292_p11) }
 0x2e4   : > { %v1888_v54 = vld [vmem:[#allocation9 + $0x20] sm:$0xff] (%p1292_p11)  ;;  %v1887_v56 = vld [vmem:[#allocation9 + $0x18] sm:$0xff] (%p1292_p11)  ;;  %v1886_v58 = vld [vmem:[#allocation9 + $0x10] sm:$0xff] (%p1292_p11) }
 0x2e5   : > { %v1877_v59 = vld [vmem:[#allocation7 + $0x8] sm:$0xff] (%p1292_p11)  ;;  %v1876_v60 = vld [vmem:[#allocation7] sm:$0xff] (%p1292_p11)  ;;  %v1297_v61 = vld [vmem:[#allocation4] sm:$0xff] (%p1292_p11) }
 0x2e6   : > { %1368 = vmatpush.bf16.msra.mxu0 (%p1292_p11), %v1882_v13  ;;  %v1298_v62 = vpack.c.bf16 (%p1292_p11), %v1297_v61, %v1297_v61  ;;  %v1885_v63 = vld [vmem:[#allocation9 + $0x8] sm:$0xff] (%p1292_p11)  ;;  %v1884_v0 = vld [vmem:[#allocation9] sm:$0xff] (%p1292_p11)  ;;  %v1899_v1 = vld [vmem:[#allocation10 + $0x38] sm:$0xff] (%p1292_p11) }
 0x2e7   : > { %1451 = vmatpush.bf16.msra.mxu1 %v1890_v18  ;;  %1533 = vmatpush.bf16.msra.mxu2 %v1899_v1  ;;  %v1898_v2 = vld [vmem:[#allocation10 + $0x30] sm:$0xff]  ;;  %v1897_v3 = vld [vmem:[#allocation10 + $0x28] sm:$0xff]  ;;  %v1896_v4 = vld [vmem:[#allocation10 + $0x20] sm:$0xff] }
 0x2e8   : > { %v1895_v5 = vld [vmem:[#allocation10 + $0x18] sm:$0xff]  ;;  %v1894_v6 = vld [vmem:[#allocation10 + $0x10] sm:$0xff]  ;;  %v1893_v17 = vld [vmem:[#allocation10 + $0x8] sm:$0xff] }
 0x2e9   : > { %v2038_v7 = vld [vmem:[%s2611_s8] ss:$0 sm:$0xff]  ;;  %v1892_v20 = vld [vmem:[#allocation10] sm:$0xff] }
 0x2ea   : > { %1369 = vmatpush.bf16.msra.mxu0 %v1881_v50  ;;  %v2039_v9 = vld [vmem:[%s2613_s10] ss:$0 sm:$0xff] }
 0x2eb   : > { %1452 = vmatpush.bf16.msra.mxu1 %v1889_v52  ;;  %1534 = vmatpush.bf16.msra.mxu2 %v1898_v2  ;;  %v2040_v32 = vld [vmem:[%s2615_s12] ss:$0 sm:$0xff] }
 0x2ee   : > { %1370 = vmatpush.bf16.msra.mxu0 %v1880_v53 }
 0x2ef   : > { %1453 = vmatpush.bf16.msra.mxu1 %v1888_v54  ;;  %1535 = vmatpush.bf16.msra.mxu2 %v1897_v3 }
 0x2f2   : > { %1371 = vmatpush.bf16.msra.mxu0 %v1879_v55 }
 0x2f3   : > { %1454 = vmatpush.bf16.msra.mxu1 %v1887_v56  ;;  %1536 = vmatpush.bf16.msra.mxu2 %v1896_v4 }
 0x2f6   : > { %1372 = vmatpush.bf16.msra.mxu0 %v1878_v57 }
 0x2f7   : > { %1455 = vmatpush.bf16.msra.mxu1 %v1886_v58  ;;  %1537 = vmatpush.bf16.msra.mxu2 %v1895_v5 }
 0x2fa   : > { %1373 = vmatpush.bf16.msra.mxu0 %v1877_v59 }
 0x2fb   : > { %1456 = vmatpush.bf16.msra.mxu1 %v1885_v63  ;;  %1538 = vmatpush.bf16.msra.mxu2 %v1894_v6 }
 0x2fe   : > { %1374 = vmatpush.bf16.msra.mxu0 %v1876_v60 }
 0x2ff   : > { %1457 = vmatpush.bf16.msra.mxu1 %v1884_v0  ;;  %1539 = vmatpush.bf16.msra.mxu2 %v1893_v17 }
 0x301   : > { %1375 = vmatmul.bf16.vlgmr.msra.gmra.mxu0 %v1298_v62 }
 0x303   : > { %1540 = vmatpush.bf16.msra.mxu2 %v1892_v20 }
 0x37e   : > { %v1376_v8 = vpop.f32.mrf.mxu0 }
 0x37f   : > { %v1377_v10 = vadd.f32 %v2038_v7, %v1376_v8 }
 0x381   : > { %v1380_v11 = vmax.f32 %v1377_v10, 0.0 }
 0x383   : > { %v1381_v14 = vpack.c.bf16 %v1380_v11, %v1380_v11 }
 0x385   : > { %1458 = vmatmul.bf16.vlgmr.msra.gmra.mxu1 %v1381_v14 }
 0x386   : > { %v1378_v15 = vpop.f32.mrf.mxu0 }
 0x402   : > { %v1459_v23 = vpop.f32.mrf.mxu1 }
 0x403   : > { %v1460_v25 = vadd.f32 %v2039_v9, %v1459_v23 }
 0x405   : > { %v1463_v27 = vmax.f32 %v1460_v25, 0.0 }
 0x407   : > { %v1464_v29 = vpack.c.bf16 %v1463_v27, %v1463_v27 }
 0x409   : > { %1541 = vmatmul.bf16.vlgmr.msra.gmra.mxu2 %v1464_v29 }
 0x40a   : > { %v1461_v30 = vpop.f32.mrf.mxu1 }
 0x48c   : > { %v1542_v21 = vpop.f32.mrf.mxu2 }
 0x48d   : > { %v1543_v35 = vadd.f32 %v2040_v32, %v1542_v21 }
 0x48f   : > { %1546 = vst [vmem:[%s2630_s29] sm:$0xff] %v1543_v35 }
 0x494   : > { %v1544_v37 = vpop.f32.mrf.mxu2 }
 0x495 PF: > { %s2631_s22 = sld [smem:[#allocation16_spill]] }
 0x496   : > { %s2632_s25 = sld [smem:[#allocation15_spill]] }
 0x497   : > { %s2633_s26 = sld [smem:[#allocation17_spill]] }
 0x49b   : > { %s26_s27 = sadd.s32 1, %s2631_s22  }
 0x49c   : > { %p23_p12 = scmp.ge.s32.totalorder %s26_s27, 4  }
 0x49e   :  { %25 = sbr.rel (!%p23_p12) target bundleno = 7 (0x7), region = 151 }
 0x4a3   :  { %1558 = vsyncpa [#allocation6], 1 }
 0x4a4   :  { %1560 = vsyncpa [#allocation6 + $0x1], 1 }
 0x4a5   :  { %1561 = vsyncpa [#allocation8], 1 }
 0x4a6   :  { %1562 = vsyncpa [#allocation11], 1 }

</bundles_post_ra>
